<compile_context>
chip_gen: v7x
topology: tpu7x:2x2x1
jax: 0.10.0
libtpu: 0.0.40
codegen_flags: <defaults>
</compile_context>

<pallas_src>
import functools

import jax
import jax.numpy as jnp
from jax import lax
from jax.experimental import pallas as pl
from jax.experimental.pallas import tpu as pltpu

_MASK_FILL = -1e4  # finite neutral logit: exp underflows to 0 -> bce/p/t contributions are exactly 0


def _vmem_capacity_bytes():
    """Best-effort per-core VMEM capacity; conservative (v7x-safe) fallback."""
    try:
        cap = getattr(pltpu.get_tpu_info(), "vmem_capacity_bytes", None)
        if cap:
            return int(cap)
    except Exception:
        pass
    try:
        kind = jax.devices()[0].device_kind.lower()
    except Exception:
        kind = ""
    if ("v5" in kind or "v6" in kind) and "7" not in kind:
        return 128 * 1024 * 1024
    return 64 * 1024 * 1024


def _tensorcores_per_device():
    """2 TensorCores per device on megacore parts (v4 / v5p / v7x), else 1."""
    try:
        kind = jax.devices()[0].device_kind.lower().replace(" ", "")
    except Exception:
        return 1
    if any(s in kind for s in ("v4", "v5p", "v7", "7x")):
        return 2
    return 1


def _bce_dice_partials_kernel(x_ref, t_ref, out_ref, *, block_d, d_sub, strip_w, unroll):
    """Accumulate lane-dense partial sums of (bce, p*t, p+t) over grid axis 1.

    out_ref block: (1, 3, row_block, strip_w), resident across the reduction axis.
    """
    k = pl.program_id(1)

    @pl.when(k == 0)
    def _():
        out_ref[...] = jnp.zeros_like(out_ref)

    rows = x_ref.shape[0]
    # Number of valid lanes remaining in this chunk (>= block_d except on the tail chunk).
    valid = d_sub - k * block_d
    lane = lax.broadcasted_iota(jnp.int32, (rows, strip_w), 1)
    nstrips = block_d // strip_w

    def strip(j, carry):
        off = pl.multiple_of(j * strip_w, strip_w)
        m = lane < (valid - off)
        x = jnp.where(m, x_ref[:, pl.ds(off, strip_w)].astype(jnp.float32), _MASK_FILL)
        t = jnp.where(m, t_ref[:, pl.ds(off, strip_w)].astype(jnp.float32), 0.0)

        # Shared EUP work: one exp feeds both the BCE term and the sigmoid.
        e = jnp.exp(-jnp.abs(x))
        # Numerically stable BCE-with-logits: max(x,0) - x*t + log1p(exp(-|x|)).
        bce = jnp.maximum(x, 0.0) - x * t + jnp.log1p(e)
        # sigmoid(x) = 1/(1+e) for x >= 0, e/(1+e) for x < 0   (e = exp(-|x|)).
        inv = pl.reciprocal(1.0 + e, approx=False)  # exact; matches the f32 reference
        p = jnp.where(x >= 0.0, inv, e * inv)

        out_ref[0, 0, :, :] = out_ref[0, 0, :, :] + bce
        out_ref[0, 1, :, :] = out_ref[0, 1, :, :] + p * t
        out_ref[0, 2, :, :] = out_ref[0, 2, :, :] + (p + t)
        return carry

    lax.fori_loop(0, nstrips, strip, 0, unroll=unroll)


def bce_dice_loss_weighted(logits, target):
    """logits, target: same-shape N[,C,H,W,...] float arrays. Returns scalar f32 loss."""
    assert logits.shape == target.shape
    n = logits.shape[0]
    d = 1
    for s in logits.shape[1:]:
        d *= s
    assert n > 0 and d > 0

    item_sum = logits.dtype.itemsize + target.dtype.itemsize
    min_item = min(logits.dtype.itemsize, target.dtype.itemsize)
    q = 8 if min_item >= 4 else (16 if min_item == 2 else 32)  # sublane quantum

    # --- Row packing: free reshape (n, d) -> (n*r, d//r); r must divide d exactly. ---
    max_rows = 64
    r_cap = min(max(1, max_rows // n), max(1, d // 128))
    r = 1
    for cand in range(1, r_cap + 1):
        if d % cand == 0 and (n * cand) % q == 0:
            r = cand
    n_rows = n * r
    d_sub = d // r

    # --- Row blocking (grid axis 0): divisor of n_rows, multiple of q, <= 32.
    #     On 2-TC parts keep >= 2 row blocks so the work splits across cores. ---
    tc = _tensorcores_per_device()
    rb_cap = 32
    if tc > 1 and (n_rows // 2) >= q:
        rb_cap = min(rb_cap, n_rows // 2)
    row_block = n_rows  # fallback: single full-dim block (always legal)
    if n_rows % q == 0:
        best = 0
        for cand in range(q, min(rb_cap, n_rows) + 1, q):
            if n_rows % cand == 0:
                best = cand
        if best:
            row_block = best
    num_row_blocks = n_rows // row_block

    # --- Reduction tiling: generation-aware VMEM budget for the two streamed inputs. ---
    vmem_cap = _vmem_capacity_bytes()
    input_budget = (vmem_cap * 3) // 8                      # 2 inputs x 2 pipeline buffers
    per_step_cap = min(input_budget // 2, 16 * 1024 * 1024)  # bytes for (x + t), single buffer
    if d_sub >= 128:
        block_d = per_step_cap // (row_block * item_sum)
        block_d = max(128, (min(block_d, d_sub) // 128) * 128)
        strip_w = 128
    else:
        block_d = d_sub
        strip_w = d_sub
    total_chunks = -(-d_sub // block_d)

    nstrips = block_d // strip_w
    unroll = 4 if row_block <= 8 else (2 if row_block <= 32 else 1)
    unroll = max(1, min(unroll, nstrips))

    vmem_limit = int(min((vmem_cap * 7) // 10, 100 * 1024 * 1024))

    x2d = logits.reshape(n_rows, d_sub)
    t2d = target.reshape(n_rows, d_sub)

    kernel = functools.partial(
        _bce_dice_partials_kernel,
        block_d=block_d, d_sub=d_sub, strip_w=strip_w, unroll=unroll)

    partials = pl.pallas_call(
        kernel,
        out_shape=jax.ShapeDtypeStruct((num_row_blocks, 3, row_block, strip_w), jnp.float32),
        grid_spec=pltpu.PrefetchScalarGridSpec(
            num_scalar_prefetch=0,
            grid=(num_row_blocks, total_chunks),
            in_specs=[
                pl.BlockSpec((row_block, block_d), lambda rb, k: (rb, k)),
                pl.BlockSpec((row_block, block_d), lambda rb, k: (rb, k)),
            ],
            out_specs=pl.BlockSpec((1, 3, row_block, strip_w), lambda rb, k: (rb, 0, 0, 0)),
        ),
        compiler_params=pltpu.CompilerParams(
            dimension_semantics=("parallel", "arbitrary"),
            vmem_limit_bytes=vmem_limit),
    )(x2d, t2d)

    # Tiny finalize in plain JAX: cross-lane + per-sample reduce, then the scalar loss.
    lane_sum = partials.sum(axis=-1)                                   # (nrb, 3, row_block)
    per_row = jnp.transpose(lane_sum, (1, 0, 2)).reshape(3, n_rows)    # global row order
    stats = per_row.reshape(3, n, r).sum(axis=2)                       # (3, n)
    bce_mean = stats[0].sum() / jnp.float32(n * d)
    scores = 2.0 * (stats[1] + 1.0) / (stats[2] + 1.0)
    dice_score = jnp.clip(jnp.sum(scores) / jnp.float32(n), 0.0, 1.0)
    return 1.5 * bce_mean + 0.5 * (1.0 - dice_score)


def _reference(logits, target):
    x = logits.astype(jnp.float32)
    t = target.astype(jnp.float32)
    bce = jnp.mean(jnp.maximum(x, 0.0) - x * t + jnp.log1p(jnp.exp(-jnp.abs(x))))
    n = x.shape[0]
    p = jax.nn.sigmoid(x).reshape(n, -1)
    tt = t.reshape(n, -1)
    inter = jnp.sum(p * tt, axis=1)
    scores = 2.0 * (inter + 1.0) / (jnp.sum(p, axis=1) + jnp.sum(tt, axis=1) + 1.0)
    score = jnp.clip(jnp.sum(scores) / n, 0.0, 1.0)
    return 1.5 * bce + 0.5 * (1.0 - score)


if __name__ == "__main__":
    key = jax.random.PRNGKey(0)
    k1, k2, k3, k4 = jax.random.split(key, 4)

    # Layout: NCHW, batch=2, channels=4, spatial=16x16.
    logits = jax.random.normal(k1, (2, 4, 16, 16), dtype=jnp.float32)
    target = (jax.random.uniform(k2, (2, 4, 16, 16)) > 0.5).astype(jnp.float32)

    loss = bce_dice_loss_weighted(logits, target)
    jax.block_until_ready(loss)
    ref = _reference(logits, target)
    assert jnp.allclose(loss, ref, rtol=1e-5, atol=1e-5), (loss, ref)

    # Ragged shape (d = 3*7*11 = 231): exercises the in-kernel tail masking path
    # (no wrapper-side padding copy).
    logits2 = jax.random.normal(k3, (2, 3, 7, 11), dtype=jnp.float32)
    target2 = (jax.random.uniform(k4, (2, 3, 7, 11)) > 0.5).astype(jnp.float32)
    loss2 = bce_dice_loss_weighted(logits2, target2)
    jax.block_until_ready(loss2)
    ref2 = _reference(logits2, target2)
    assert jnp.allclose(loss2, ref2, rtol=1e-5, atol=1e-5), (loss2, ref2)

    print("KERNEL_OK")
</pallas_src>

<mosaic_0001>
module attributes {stable_mosaic.version = 11 : i64} {
  func.func @_bce_dice_partials_kernel(%arg0: i32, %arg1: i32, %arg2: memref<16x128xf32, #tpu.memory_space<vmem>>, %arg3: memref<16x128xf32, #tpu.memory_space<vmem>>, %arg4: memref<1x3x16x128xf32, #tpu.memory_space<vmem>>) attributes {dimension_semantics = [#tpu.dimension_semantics<parallel>, #tpu.dimension_semantics<arbitrary>], iteration_bounds = array<i64: 1, 1>, scalar_prefetch = 0 : i64, scratch_operands = 0 : i64, tpu.core_type = #tpu.core_type<tc>, window_params = [{transform_indices = @transform_0, window_bounds = array<i64: 16, 128>}, {transform_indices = @transform_1, window_bounds = array<i64: 16, 128>}, {transform_indices = @transform_2, window_bounds = array<i64: 1, 3, 16, 128>}]} {
    %c0_i32 = arith.constant 0 : i32
    %0 = arith.cmpi eq, %arg1, %c0_i32 : i32
    %1 = arith.extui %0 : i1 to i32
    %c0_i32_0 = arith.constant 0 : i32
    %2 = arith.cmpi ne, %1, %c0_i32_0 : i32
    scf.if %2 {
      %cst_32 = arith.constant 0.000000e+00 : f32
      %56 = vector.broadcast %cst_32 : f32 to vector<1x3x16x128xf32>
      %c0_33 = arith.constant 0 : index
      %c0_34 = arith.constant 0 : index
      %c0_35 = arith.constant 0 : index
      %c0_36 = arith.constant 0 : index
      %57 = vector.load %arg4[%c0_33, %c0_34, %c0_35, %c0_36] : memref<1x3x16x128xf32, #tpu.memory_space<vmem>>, vector<1x3x16x128xf32>
      tpu.vector_store %arg4[%c0_33, %c0_34, %c0_35, %c0_36], %56 {strides = array<i32>} : memref<1x3x16x128xf32, #tpu.memory_space<vmem>>, vector<1x3x16x128xf32>,
    } else {
    }
    %c128_i32 = arith.constant 128 : i32
    %3 = arith.muli %arg1, %c128_i32 : i32
    %c128_i32_1 = arith.constant 128 : i32
    %4 = arith.subi %c128_i32_1, %3 : i32
    %5 = tpu.iota {dimensions = array<i32: 1>} : vector<16x128xi32>
    %c0_i32_2 = arith.constant 0 : i32
    %c128_i32_3 = arith.constant 128 : i32
    %6 = arith.muli %c0_i32_2, %c128_i32_3 : i32
    %7 = tpu.assume_multiple %6, 128 : i32
    %8 = arith.subi %4, %7 : i32
    %9 = vector.broadcast %8 : i32 to vector<16x128xi32>
    %10 = arith.cmpi slt, %5, %9 : vector<16x128xi32>
    %c0 = arith.constant 0 : index
    %11 = arith.index_cast %7 : i32 to index
    %12 = vector.load %arg2[%c0, %11] : memref<16x128xf32, #tpu.memory_space<vmem>>, vector<16x128xf32>
    %cst = arith.constant -1.000000e+04 : f32
    %13 = vector.broadcast %cst : f32 to vector<16x128xf32>
    %14 = arith.select %10, %12, %13 : vector<16x128xi1>, vector<16x128xf32>
    %c0_4 = arith.constant 0 : index
    %15 = arith.index_cast %7 : i32 to index
    %16 = vector.load %arg3[%c0_4, %15] : memref<16x128xf32, #tpu.memory_space<vmem>>, vector<16x128xf32>
    %cst_5 = arith.constant 0.000000e+00 : f32
    %17 = vector.broadcast %cst_5 : f32 to vector<16x128xf32>
    %18 = arith.select %10, %16, %17 : vector<16x128xi1>, vector<16x128xf32>
    %19 = math.absf %14 : vector<16x128xf32>
    %cst_6 = arith.constant 0.000000e+00 : f32
    %20 = vector.broadcast %cst_6 : f32 to vector<16x128xf32>
    %21 = arith.subf %20, %19 : vector<16x128xf32>
    %22 = math.exp %21 : vector<16x128xf32>
    %cst_7 = arith.constant 0.000000e+00 : f32
    %23 = vector.broadcast %cst_7 : f32 to vector<16x128xf32>
    %24 = arith.maximumf %14, %23 : vector<16x128xf32>
    %25 = arith.mulf %14, %18 : vector<16x128xf32>
    %26 = arith.subf %24, %25 : vector<16x128xf32>
    %27 = math.log1p %22 : vector<16x128xf32>
    %28 = arith.addf %26, %27 : vector<16x128xf32>
    %cst_8 = arith.constant 1.000000e+00 : f32
    %29 = vector.broadcast %cst_8 : f32 to vector<16x128xf32>
    %30 = arith.addf %29, %22 : vector<16x128xf32>
    %31 = tpu.reciprocal %30 : vector<16x128xf32> -> vector<16x128xf32>
    %cst_9 = arith.constant 0.000000e+00 : f32
    %32 = vector.broadcast %cst_9 : f32 to vector<16x128xf32>
    %33 = arith.cmpf oge, %14, %32 : vector<16x128xf32>
    %34 = arith.mulf %22, %31 : vector<16x128xf32>
    %35 = arith.select %33, %31, %34 : vector<16x128xi1>, vector<16x128xf32>
    %c0_10 = arith.constant 0 : index
    %c0_11 = arith.constant 0 : index
    %c0_12 = arith.constant 0 : index
    %c0_13 = arith.constant 0 : index
    %36 = vector.load %arg4[%c0_10, %c0_11, %c0_12, %c0_13] : memref<1x3x16x128xf32, #tpu.memory_space<vmem>>, vector<1x1x16x128xf32>
    %37 = vector.shape_cast %36 : vector<1x1x16x128xf32> to vector<16x128xf32>
    %38 = arith.addf %37, %28 : vector<16x128xf32>
    %c0_14 = arith.constant 0 : index
    %c0_15 = arith.constant 0 : index
    %c0_16 = arith.constant 0 : index
    %c0_17 = arith.constant 0 : index
    %39 = vector.load %arg4[%c0_14, %c0_15, %c0_16, %c0_17] : memref<1x3x16x128xf32, #tpu.memory_space<vmem>>, vector<1x1x16x128xf32>
    %40 = vector.shape_cast %39 : vector<1x1x16x128xf32> to vector<16x128xf32>
    %41 = vector.shape_cast %38 : vector<16x128xf32> to vector<1x1x16x128xf32>
    tpu.vector_store %arg4[%c0_14, %c0_15, %c0_16, %c0_17], %41 {strides = array<i32>} : memref<1x3x16x128xf32, #tpu.memory_space<vmem>>, vector<1x1x16x128xf32>,
    %c0_18 = arith.constant 0 : index
    %c1 = arith.constant 1 : index
    %c0_19 = arith.constant 0 : index
    %c0_20 = arith.constant 0 : index
    %42 = vector.load %arg4[%c0_18, %c1, %c0_19, %c0_20] : memref<1x3x16x128xf32, #tpu.memory_space<vmem>>, vector<1x1x16x128xf32>
    %43 = vector.shape_cast %42 : vector<1x1x16x128xf32> to vector<16x128xf32>
    %44 = arith.mulf %35, %18 : vector<16x128xf32>
    %45 = arith.addf %43, %44 : vector<16x128xf32>
    %c0_21 = arith.constant 0 : index
    %c1_22 = arith.constant 1 : index
    %c0_23 = arith.constant 0 : index
    %c0_24 = arith.constant 0 : index
    %46 = vector.load %arg4[%c0_21, %c1_22, %c0_23, %c0_24] : memref<1x3x16x128xf32, #tpu.memory_space<vmem>>, vector<1x1x16x128xf32>
    %47 = vector.shape_cast %46 : vector<1x1x16x128xf32> to vector<16x128xf32>
    %48 = vector.shape_cast %45 : vector<16x128xf32> to vector<1x1x16x128xf32>
    tpu.vector_store %arg4[%c0_21, %c1_22, %c0_23, %c0_24], %48 {strides = array<i32>} : memref<1x3x16x128xf32, #tpu.memory_space<vmem>>, vector<1x1x16x128xf32>,
    %c0_25 = arith.constant 0 : index
    %c2 = arith.constant 2 : index
    %c0_26 = arith.constant 0 : index
    %c0_27 = arith.constant 0 : index
    %49 = vector.load %arg4[%c0_25, %c2, %c0_26, %c0_27] : memref<1x3x16x128xf32, #tpu.memory_space<vmem>>, vector<1x1x16x128xf32>
    %50 = vector.shape_cast %49 : vector<1x1x16x128xf32> to vector<16x128xf32>
    %51 = arith.addf %35, %18 : vector<16x128xf32>
    %52 = arith.addf %50, %51 : vector<16x128xf32>
    %c0_28 = arith.constant 0 : index
    %c2_29 = arith.constant 2 : index
    %c0_30 = arith.constant 0 : index
    %c0_31 = arith.constant 0 : index
    %53 = vector.load %arg4[%c0_28, %c2_29, %c0_30, %c0_31] : memref<1x3x16x128xf32, #tpu.memory_space<vmem>>, vector<1x1x16x128xf32>
    %54 = vector.shape_cast %53 : vector<1x1x16x128xf32> to vector<16x128xf32>
    %55 = vector.shape_cast %52 : vector<16x128xf32> to vector<1x1x16x128xf32>
    tpu.vector_store %arg4[%c0_28, %c2_29, %c0_30, %c0_31], %55 {strides = array<i32>} : memref<1x3x16x128xf32, #tpu.memory_space<vmem>>, vector<1x1x16x128xf32>,
    %c1_i32 = arith.constant 1 : i32
    return
  }
  func.func @transform_0(%arg0: i32, %arg1: i32) -> (i32, i32) {
    %c0_i32 = arith.constant 0 : i32
    return %arg0, %arg1 : i32, i32
  }
  func.func @transform_1(%arg0: i32, %arg1: i32) -> (i32, i32) {
    %c0_i32 = arith.constant 0 : i32
    return %arg0, %arg1 : i32, i32
  }
  func.func @transform_2(%arg0: i32, %arg1: i32) -> (i32, i32, i32, i32) {
    %c0_i32 = arith.constant 0 : i32
    %c0_i32_0 = arith.constant 0 : i32
    %c0_i32_1 = arith.constant 0 : i32
    %c0_i32_2 = arith.constant 0 : i32
    return %arg0, %c0_i32, %c0_i32_0, %c0_i32_1 : i32, i32, i32, i32
  }
}

</mosaic_0001>

<bundles_post_ra>
// kernel: tpu_custom_call.1
= control target key start
LH: loop header
LB: loop body
LE: loop exit
PB: predicated region body
PF: predicated region fallthrough
CT: control target
= control target key end

     0   :  { %7 = vsyncpa [#allocation3], 0  ;;  %s306_s0 = inlined_call_operand.hbm [shape: f32[16,128], index: 0, kind: input, shape index: {}]   ;;  %s307_s1 = inlined_call_operand.hbm [shape: f32[16,128], index: 1, kind: input, shape index: {}]   ;;  %s308_s2 = inlined_call_operand.hbm [shape: f32[1,3,16,128], index: 2, kind: output, shape index: {}]  }
   0x1   :  { %8 = vsyncpa [#allocation6], 0 }
   0x2   :  { %9 = vsyncpa [#allocation4], 0  ;;  %s241_s9 = smov [#allocation2]   ;;  %s169_s13 = scalar_lea.hbm %s306_s0, 256 }
   0x3   :  { %s15_s10 = sshll.u32 %s241_s9, 4  ;;  %p170_p0 = scmp.ne.s32.totalorder %s306_s0, %s169_s13  ;;  %s16_s10 = int_to_ptr.vmem [resolvable:$true] %s15_s10 }
   0x4   :  { %p173_p1 = scmp.lt.u32.totalorder %s169_s13, %s306_s0 }
   0x6   :  { %p175_p2 = pnand %p173_p1, %p170_p0 }
   0x8   :  { %178 = shalt.err (!%p175_p2)
}
   0x9   :  { %s179_s18 = scalar_lea.vmem %s16_s10, 256  ;;  %p184_p4 = scmp.lt.s32.totalorder %s16_s10, %s16_s10 }
   0xa   :  { %p180_p3 = scmp.ne.s32.totalorder %s16_s10, %s179_s18  ;;  %p185_p5 = scmp.lt.s32.totalorder %s179_s18, %s179_s18 }
   0xc   :  { %p186_p6 = por %p185_p5, %p184_p4 }
   0xe   :  { %p187_p7 = pnand %p186_p6, %p180_p3 }
  0x10   :  { %190 = shalt.err (!%p187_p7)
}
  0x11   :  { %s242_s19 = smov 128   ;;  %s243_s20 = smov 8  }
  0x12   :  { %21 = dma.hbm_to_vmem [thread:$0]  %s306_s0, 256, %s16_s10, [#allocation3], %s242_s19, %s242_s19, %s243_s20  }
  0x13   :  { %s244_s23 = smov [#allocation5]   ;;  %s191_s27 = scalar_lea.hbm %s307_s1, 256 }
  0x14   :  { %s27_s24 = sshll.u32 %s244_s23, 4  ;;  %p192_p8 = scmp.ne.s32.totalorder %s307_s1, %s191_s27  ;;  %s28_s24 = int_to_ptr.vmem [resolvable:$true] %s27_s24 }
  0x15   :  { %p195_p9 = scmp.lt.u32.totalorder %s191_s27, %s307_s1 }
  0x17   :  { %p197_p10 = pnand %p195_p9, %p192_p8 }
  0x19   :  { %200 = shalt.err (!%p197_p10)
}
  0x1a   :  { %s201_s4 = scalar_lea.vmem %s28_s24, 256  ;;  %p206_p12 = scmp.lt.s32.totalorder %s28_s24, %s28_s24 }
  0x1b   :  { %p202_p11 = scmp.ne.s32.totalorder %s28_s24, %s201_s4  ;;  %p207_p13 = scmp.lt.s32.totalorder %s201_s4, %s201_s4 }
  0x1d   :  { %p208_p0 = por %p207_p13, %p206_p12 }
  0x1f   :  { %p209_p1 = pnand %p208_p0, %p202_p11 }
  0x21   :  { %212 = shalt.err (!%p209_p1)
}
  0x22   :  { %33 = dma.hbm_to_vmem [thread:$0]  %s307_s1, 256, %s28_s24, [#allocation6], %s242_s19, %s242_s19, %s243_s20  }
  0x23   :  { %235 = dma.done.wait [#allocation3], 256  }
  0x24   :  { %236 = vsyncadd [#allocation3], 4294967040 }
  0x25   :  { %237 = dma.done.wait [#allocation6], 256  }
  0x26   :  { %238 = vsyncadd [#allocation6], 4294967040  ;;  %v57_v0 = vld [vmem:[#allocation2] sm:$0xff]  ;;  %v58_v1 = vld [vmem:[#allocation2 + $0x8] sm:$0xff]  ;;  %s245_s1 = smov [#allocation7]  }
  0x27   :  { %v65_v2 = vand.u32 2147483647, %v57_v0  ;;  %v66_v3 = vand.u32 2147483647, %v58_v1  ;;  %v61_v13 = vld [vmem:[#allocation5] sm:$0xff]  ;;  %v62_v16 = vld [vmem:[#allocation5 + $0x8] sm:$0xff] }
  0x28   :  { %v73_v17 = vmax.f32 %v57_v0, 0.0  ;;  %v75_v18 = vmul.f32 %v61_v13, %v57_v0  ;;  %v74_v21 = vmax.f32 %v58_v1, 0.0  ;;  %v76_v22 = vmul.f32 %v62_v16, %v58_v1  ;;  %s138_s6 = sshll.u32 %s245_s1, 4  ;;  %s139_s6 = int_to_ptr.vmem [resolvable:$true] %s138_s6 }
  0x29   :  { %v67_v4 = vsub.f32 0.0, %v65_v2  ;;  %v68_v5 = vsub.f32 0.0, %v66_v3  ;;  %vm103_vm1 = vcmp.ge.f32.partialorder %v57_v0, 0.0  ;;  %vm104_vm3 = vcmp.ge.f32.partialorder %v58_v1, 0.0  ;;  %s213_s7 = scalar_lea.vmem %s139_s6, 768  ;;  %p218_p3 = scmp.lt.s32.totalorder %s139_s6, %s139_s6 }
  0x2a   :  { %v77_v26 = vsub.f32 %v73_v17, %v75_v18  ;;  %v78_v31 = vsub.f32 %v74_v21, %v76_v22  ;;  %p214_p2 = scmp.ne.s32.totalorder %s139_s6, %s213_s7  ;;  %p219_p4 = scmp.lt.s32.totalorder %s213_s7, %s213_s7 }
  0x2b   :  { %v69_v6 = vmul.f32 1.442695, %v67_v4  ;;  %v71_v7 = vmul.f32 1.442695, %v68_v5 }
  0x2c   :  { %p220_p5 = por %p219_p4, %p218_p3 }
  0x2d   :  { %157 = vpow2.f32 %v69_v6 }
  0x2e   :  { %159 = vpow2.f32 %v71_v7  ;;  %p221_p6 = pnand %p220_p5, %p214_p2 }
  0x37   :  { %v158_v8 = vpop.eup %157 }
  0x38   :  { %v160_v9 = vpop.eup %159  ;;  %v79_v10 = vadd.f32 1.0, %v158_v8  ;;  %v82_v12 = vmul.f32 -0.5, %v158_v8  ;;  %v85_v19 = vand.u32 2147483647, %v158_v8 }
  0x39   :  { %v88_v11 = vadd.f32 1.0, %v160_v9  ;;  %v91_v14 = vmul.f32 -0.5, %v160_v9  ;;  %v94_v23 = vand.u32 2147483647, %v160_v9 }
  0x3a   :  { %161 = vlog2.f32 %v79_v10  ;;  %v83_v15 = vadd.f32 1.0, %v82_v12  ;;  %vm86_vm0 = vcmp.lt.f32.partialorder %v85_v19, 0.0004427343 }
  0x3b   :  { %163 = vrcp.f32 %v79_v10  ;;  %v92_v20 = vadd.f32 1.0, %v91_v14  ;;  %vm95_vm2 = vcmp.lt.f32.partialorder %v94_v23, 0.0004427343 }
  0x3c   :  { %165 = vlog2.f32 %v88_v11  ;;  %v84_v24 = vmul.f32 %v158_v8, %v83_v15 }
  0x3d   :  { %167 = vrcp.f32 %v88_v11  ;;  %v93_v29 = vmul.f32 %v160_v9, %v92_v20 }
  0x44   :  { %v162_v25 = vpop.eup %161 }
  0x45   :  { %v164_v27 = vpop.eup %163  ;;  %v81_v28 = vmul.f32 0.6931472, %v162_v25 }
  0x46   :  { %v166_v30 = vpop.eup %165  ;;  %v105_v32 = vmul.f32 %v164_v27, %v158_v8 }
  0x47   :  { %v168_v33 = vpop.eup %167  ;;  %v87_v34 = vsel %vm86_vm0, %v84_v24, %v81_v28  ;;  %v90_v35 = vmul.f32 0.6931472, %v166_v30 }
  0x48   :  { %v97_v36 = vadd.f32 %v87_v34, %v77_v26  ;;  %v107_v37 = vsel %vm103_vm1, %v164_v27, %v105_v32  ;;  %v106_v38 = vmul.f32 %v168_v33, %v160_v9 }
  0x49   :  { %v96_v39 = vsel %vm95_vm2, %v93_v29, %v90_v35  ;;  %v118_v40 = vmul.f32 %v107_v37, %v61_v13  ;;  %v127_v41 = vadd.f32 %v107_v37, %v61_v13 }
  0x4a   :  { %v98_v42 = vadd.f32 %v96_v39, %v78_v31  ;;  %v108_v43 = vsel %vm104_vm3, %v168_v33, %v106_v38  ;;  %113 = vst [vmem:[#allocation7] sm:$0xff] %v97_v36 }
  0x4b   :  { %v119_v44 = vmul.f32 %v108_v43, %v62_v16  ;;  %v128_v45 = vadd.f32 %v108_v43, %v62_v16  ;;  %122 = vst [vmem:[#allocation7 + $0x10] sm:$0xff] %v118_v40  ;;  %131 = vst [vmem:[#allocation7 + $0x20] sm:$0xff] %v127_v41 }
  0x4c   :  { %114 = vst [vmem:[#allocation7 + $0x8] sm:$0xff] %v98_v42 }
  0x4d   :  { %123 = vst [vmem:[#allocation7 + $0x18] sm:$0xff] %v119_v44  ;;  %132 = vst [vmem:[#allocation7 + $0x28] sm:$0xff] %v128_v45 }
  0x4e   :  { %224 = shalt.err (!%p221_p6)
}
  0x4f   :  { %s225_s10 = scalar_lea.hbm %s308_s2, 768 }
  0x50   :  { %p226_p7 = scmp.ne.s32.totalorder %s308_s2, %s225_s10  ;;  %p229_p8 = scmp.lt.u32.totalorder %s225_s10, %s308_s2 }
  0x52   :  { %p231_p9 = pnand %p229_p8, %p226_p7 }
  0x54   :  { %234 = shalt.err (!%p231_p9)
}
  0x55   :  { %144 = dma.vmem_to_hbm [thread:$0]  %s139_s6, 768, %s308_s2, [#allocation4], %s242_s19, %s242_s19, %s243_s20  }
  0x56   :  { %239 = dma.done.wait [#allocation4], 768  }
  0x57   :  { %240 = vsyncadd [#allocation4], 4294966528 }
  0x58   :  { %148 = vsyncpa [#allocation3], 1 }
  0x59   :  { %149 = vsyncpa [#allocation6], 1 }
  0x5a   :  { %150 = vsyncpa [#allocation4], 1 }

</bundles_post_ra>
